<compile_context>
chip_gen: v7x
topology: tpu7x:2x2x1
jax: 0.10.0
libtpu: 0.0.40
codegen_flags: <defaults>
</compile_context>

<pallas_src>
import jax
import jax.numpy as jnp
import numpy as np
from jax.experimental import pallas as pl
from jax.experimental.pallas import tpu as pltpu


def _cross_attention_kernel(x_ref, y_ref,
                            w_re_t_ref, b_re_ref,
                            w_fused_ref, b_fused_ref,
                            o_ref):
    TB, N, C = y_ref.shape
    H = w_fused_ref.shape[1] // C          # fused weight is (C, H*C)

    # ---- linear_re: Linear(7C -> C) + QuickGELU (bf16 operands, f32 acc) ----
    g = jnp.dot(x_ref[...], w_re_t_ref[...],
                preferred_element_type=jnp.float32) + b_re_ref[...]      # (TB, C) f32
    g = g * jax.nn.sigmoid(1.702 * g)                                    # QuickGELU

    # ---- fused (BN ∘ q-proj ∘ head-mask ∘ k-proj) projection ----
    # p[b, h*C + d] = sum_e g[b,e] * W_fused[e, h*C+d] + b_fused[h*C+d]
    p = jnp.dot(g.astype(w_fused_ref.dtype), w_fused_ref[...],
                preferred_element_type=jnp.float32) + b_fused_ref[...]   # (TB, H*C) f32

    yf = y_ref[...].astype(jnp.float32)                                  # (TB, N, C)

    # ---- per-head scores + softmax, stored lane-dense as (TB, H*N) ----
    # attn[b,h,n] = sum_d p[b, h*C+d] * y[b,n,d]
    for h in range(H):                                                   # static unroll
        ph = p[:, h * C:(h + 1) * C]                                     # (TB, C)
        scores = jnp.sum(ph[:, None, :] * yf, axis=-1)                   # (TB, N) f32
        m = jnp.max(scores, axis=-1, keepdims=True)
        e = jnp.exp(scores - m)
        s = jnp.sum(e, axis=-1, keepdims=True)
        o_ref[:, h * N:(h + 1) * N] = e * pl.reciprocal(s, approx=True)


def cross_attention_pallas(x, y, params, num_heads, qk_scale=None):
    """x: (B, 7*C) f32, y: (B, N, C) f32 -> gates (B, H, 1, N) f32."""
    B, N, C = y.shape
    head_dim = C // num_heads
    scale = qk_scale if qk_scale is not None else head_dim ** -0.5

    # ---- wrapper-time folding (exact: eval-mode BN is affine) ----
    inv_std = 1.0 / jnp.sqrt(params["running_var"] + 1e-5)               # (C,)
    a = params["gamma"] * inv_std                                        # (C,)
    wq_t = params["wq"].T                                                # (C_in, C_out)
    wq_eff_t = (a[:, None] * wq_t) * scale                               # (C, C)
    bq_eff = ((params["beta"] - params["running_mean"] * a) @ wq_t) * scale   # (C,)

    # Fuse q-proj, head mask, and k-proj into one (C, H*C) weight + bias:
    #   W_fused[e, h*C + d] = sum_{c in head h} Wq_eff^T[e, c] * Wk[c, d]
    #   b_fused[h*C + d]    = sum_{c in head h} bq_eff[c]      * Wk[c, d]
    wk = params["wk"]                                                    # (C_out, C_in)
    wq_eff_heads = wq_eff_t.reshape(C, num_heads, head_dim)              # (e, h, j)
    wk_heads = wk.reshape(num_heads, head_dim, C)                        # (h, j, d)
    w_fused = jnp.einsum('ehj,hjd->ehd', wq_eff_heads,
                         wk_heads).reshape(C, num_heads * C)             # (C, H*C)
    b_fused = jnp.einsum('hj,hjd->hd', bq_eff.reshape(num_heads, head_dim),
                         wk_heads).reshape(1, num_heads * C)             # (1, H*C)

    # bf16 for everything that feeds the MXU; biases stay f32.
    x_b = x.astype(jnp.bfloat16)
    y_b = y.astype(jnp.bfloat16)
    w_re_t = params["w_re"].T.astype(jnp.bfloat16)                       # (7C, C)
    b_re = params["b_re"].reshape(1, C).astype(jnp.float32)
    w_fused_b = w_fused.astype(jnp.bfloat16)
    b_fused = b_fused.astype(jnp.float32)

    # Batch split only when the per-block M is MXU-meaningful; on v7x that
    # split is sharded across the two TensorCores via CORE_PARALLEL.
    nb = 2 if (B % 2 == 0 and (B // 2) >= 128) else 1
    tb = B // nb
    dim_sem = (pltpu.CORE_PARALLEL,) if nb == 2 else ("arbitrary",)

    def const(shape):
        return pl.BlockSpec(shape, lambda i: (0,) * len(shape))

    out = pl.pallas_call(
        _cross_attention_kernel,
        grid=(nb,),
        in_specs=[
            pl.BlockSpec((tb, 7 * C), lambda i: (i, 0)),      # x  (bf16)
            pl.BlockSpec((tb, N, C), lambda i: (i, 0, 0)),    # y  (bf16)
            const((7 * C, C)),                                # W_re^T (bf16)
            const((1, C)),                                    # b_re   (f32)
            const((C, num_heads * C)),                        # W_fused (bf16)
            const((1, num_heads * C)),                        # b_fused (f32)
        ],
        out_specs=pl.BlockSpec((tb, num_heads * N), lambda i: (i, 0)),
        out_shape=jax.ShapeDtypeStruct((B, num_heads * N), jnp.float32),
        compiler_params=pltpu.CompilerParams(
            dimension_semantics=dim_sem,
            vmem_limit_bytes=32 * 1024 * 1024),
    )(x_b, y_b, w_re_t, b_re, w_fused_b, b_fused)

    # (B, H*N) -> (B, H, 1, N): pure row-major reshape, no transpose.
    return out.reshape(B, num_heads, 1, N)


def cross_attention_reference(x, y, params, num_heads):
    """Pure-JAX replica of the PyTorch forward (eval-mode BatchNorm)."""
    B, N, C = y.shape
    head_dim = C // num_heads
    scale = head_dim ** -0.5
    h = x @ params["w_re"].T + params["b_re"]
    h = h * jax.nn.sigmoid(1.702 * h)
    h = ((h - params["running_mean"]) / jnp.sqrt(params["running_var"] + 1e-5)
         * params["gamma"] + params["beta"])
    q = (h @ params["wq"].T).reshape(B, 1, num_heads, head_dim).transpose(0, 2, 1, 3)
    k = (y @ params["wk"].T).reshape(B, N, num_heads, head_dim).transpose(0, 2, 1, 3)
    attn = jnp.einsum("bhqd,bhkd->bhqk", q, k) * scale
    return jax.nn.softmax(attn, axis=-1)


if __name__ == "__main__":
    B, N, C, H = 2, 8, 32, 4          # dim=32, num_heads=4 -> head_dim=8

    key = jax.random.PRNGKey(0)
    keys = jax.random.split(key, 10)
    x = jax.random.normal(keys[0], (B, 7 * C), jnp.float32)
    y = jax.random.normal(keys[1], (B, N, C), jnp.float32)

    params = dict(
        w_re=0.05 * jax.random.normal(keys[2], (C, 7 * C), jnp.float32),
        b_re=0.05 * jax.random.normal(keys[3], (C,), jnp.float32),
        gamma=1.0 + 0.1 * jax.random.normal(keys[4], (C,), jnp.float32),
        beta=0.1 * jax.random.normal(keys[5], (C,), jnp.float32),
        running_mean=0.1 * jax.random.normal(keys[6], (C,), jnp.float32),
        running_var=0.5 + jnp.abs(jax.random.normal(keys[7], (C,), jnp.float32)),
        wq=0.05 * jax.random.normal(keys[8], (C, C), jnp.float32),
        wk=0.05 * jax.random.normal(keys[9], (C, C), jnp.float32),
    )

    gates = cross_attention_pallas(x, y, params, num_heads=H)
    gates = jax.block_until_ready(gates)
    assert gates.shape == (B, H, 1, N)

    ref = cross_attention_reference(x, y, params, num_heads=H)
    # Tolerance covers bf16 MXU operands (f32 accumulation) and the EUP
    # approximate reciprocal in the softmax denominator (~1e-4 relative).
    np.testing.assert_allclose(np.asarray(gates), np.asarray(ref),
                               rtol=5e-3, atol=1e-3)
    print("KERNEL_OK")
</pallas_src>

<mosaic_0001>
module attributes {stable_mosaic.version = 11 : i64} {
  func.func @_cross_attention_kernel(%arg0: i32, %arg1: memref<2x224xbf16, #tpu.memory_space<vmem>>, %arg2: memref<2x8x32xbf16, #tpu.memory_space<vmem>>, %arg3: memref<224x32xbf16, #tpu.memory_space<vmem>>, %arg4: memref<1x32xf32, #tpu.memory_space<vmem>>, %arg5: memref<32x128xbf16, #tpu.memory_space<vmem>>, %arg6: memref<1x128xf32, #tpu.memory_space<vmem>>, %arg7: memref<2x32xf32, #tpu.memory_space<vmem>>) attributes {dimension_semantics = [#tpu.dimension_semantics<arbitrary>], iteration_bounds = array<i64: 1>, scalar_prefetch = 0 : i64, scratch_operands = 0 : i64, tpu.core_type = #tpu.core_type<tc>, window_params = [{transform_indices = @transform_0, window_bounds = array<i64: 2, 224>}, {transform_indices = @transform_1, window_bounds = array<i64: 2, 8, 32>}, {pipeline_mode = #tpu.pipeline_mode<synchronous>, transform_indices = @transform_2, window_bounds = array<i64: 224, 32>}, {pipeline_mode = #tpu.pipeline_mode<synchronous>, transform_indices = @transform_3, window_bounds = array<i64: 1, 32>}, {pipeline_mode = #tpu.pipeline_mode<synchronous>, transform_indices = @transform_4, window_bounds = array<i64: 32, 128>}, {pipeline_mode = #tpu.pipeline_mode<synchronous>, transform_indices = @transform_5, window_bounds = array<i64: 1, 128>}, {transform_indices = @transform_6, window_bounds = array<i64: 2, 32>}]} {
    %c0 = arith.constant 0 : index
    %c0_0 = arith.constant 0 : index
    %0 = vector.load %arg1[%c0, %c0_0] : memref<2x224xbf16, #tpu.memory_space<vmem>>, vector<2x224xbf16>
    %c0_1 = arith.constant 0 : index
    %c0_2 = arith.constant 0 : index
    %1 = vector.load %arg3[%c0_1, %c0_2] : memref<224x32xbf16, #tpu.memory_space<vmem>>, vector<224x32xbf16>
    %cst = arith.constant dense<0.000000e+00> : vector<2x32xf32>
    %2 = tpu.matmul %0, %1, %cst {dimension_numbers = #tpu.dot_dimension_numbers<[1], [0], [0], [1], [0, 0, 1, 1], [], []>} : vector<2x224xbf16>, vector<224x32xbf16>, vector<2x32xf32> -> vector<2x32xf32>
    %c0_3 = arith.constant 0 : index
    %c0_4 = arith.constant 0 : index
    %3 = vector.load %arg4[%c0_3, %c0_4] : memref<1x32xf32, #tpu.memory_space<vmem>>, vector<1x32xf32>
    %4 = vector.broadcast %3 : vector<1x32xf32> to vector<2x32xf32>
    %5 = arith.addf %2, %4 : vector<2x32xf32>
    %cst_5 = arith.constant 1.702000e+00 : f32
    %6 = vector.broadcast %cst_5 : f32 to vector<2x32xf32>
    %7 = arith.mulf %6, %5 : vector<2x32xf32>
    %8 = arith.negf %7 : vector<2x32xf32>
    %9 = math.exp %8 : vector<2x32xf32>
    %cst_6 = arith.constant 1.000000e+00 : f32
    %10 = vector.broadcast %cst_6 : f32 to vector<2x32xf32>
    %11 = arith.addf %10, %9 : vector<2x32xf32>
    %12 = arith.divf %10, %11 : vector<2x32xf32>
    %13 = arith.mulf %5, %12 : vector<2x32xf32>
    %14 = arith.truncf %13 : vector<2x32xf32> to vector<2x32xbf16>
    %c0_7 = arith.constant 0 : index
    %c0_8 = arith.constant 0 : index
    %15 = vector.load %arg5[%c0_7, %c0_8] : memref<32x128xbf16, #tpu.memory_space<vmem>>, vector<32x128xbf16>
    %cst_9 = arith.constant dense<0.000000e+00> : vector<2x128xf32>
    %16 = tpu.matmul %14, %15, %cst_9 {dimension_numbers = #tpu.dot_dimension_numbers<[1], [0], [0], [1], [0, 0, 1, 1], [], []>} : vector<2x32xbf16>, vector<32x128xbf16>, vector<2x128xf32> -> vector<2x128xf32>
    %c0_10 = arith.constant 0 : index
    %c0_11 = arith.constant 0 : index
    %17 = vector.load %arg6[%c0_10, %c0_11] : memref<1x128xf32, #tpu.memory_space<vmem>>, vector<1x128xf32>
    %18 = vector.broadcast %17 : vector<1x128xf32> to vector<2x128xf32>
    %19 = arith.addf %16, %18 : vector<2x128xf32>
    %c0_12 = arith.constant 0 : index
    %c0_13 = arith.constant 0 : index
    %c0_14 = arith.constant 0 : index
    %20 = vector.load %arg2[%c0_12, %c0_13, %c0_14] : memref<2x8x32xbf16, #tpu.memory_space<vmem>>, vector<2x8x32xbf16>
    %21 = arith.extf %20 : vector<2x8x32xbf16> to vector<2x8x32xf32>
    %22 = vector.extract_strided_slice %19 {offsets = [0, 0], sizes = [2, 32], strides = [1, 1]} : vector<2x128xf32> to vector<2x32xf32>
    %23 = vector.shape_cast %22 : vector<2x32xf32> to vector<2x1x32xf32>
    %24 = vector.broadcast %23 : vector<2x1x32xf32> to vector<2x8x32xf32>
    %25 = arith.mulf %24, %21 : vector<2x8x32xf32>
    %cst_15 = arith.constant dense<0.000000e+00> : vector<2x8xf32>
    %26 = vector.multi_reduction <add>, %25, %cst_15 [2] : vector<2x8x32xf32> to vector<2x8xf32>
    %cst_16 = arith.constant dense<0xFF800000> : vector<2xf32>
    %27 = vector.multi_reduction <maximumf>, %26, %cst_16 [1] : vector<2x8xf32> to vector<2xf32>
    %28 = vector.shape_cast %27 : vector<2xf32> to vector<2x1xf32>
    %29 = vector.broadcast %28 : vector<2x1xf32> to vector<2x8xf32>
    %30 = arith.subf %26, %29 : vector<2x8xf32>
    %31 = math.exp %30 : vector<2x8xf32>
    %cst_17 = arith.constant dense<0.000000e+00> : vector<2xf32>
    %32 = vector.multi_reduction <add>, %31, %cst_17 [1] : vector<2x8xf32> to vector<2xf32>
    %33 = vector.shape_cast %32 : vector<2xf32> to vector<2x1xf32>
    %34 = tpu.reciprocal %33 {approx = true} : vector<2x1xf32> -> vector<2x1xf32>
    %35 = vector.broadcast %34 : vector<2x1xf32> to vector<2x8xf32>
    %36 = arith.mulf %31, %35 : vector<2x8xf32>
    %c0_18 = arith.constant 0 : index
    %c0_19 = arith.constant 0 : index
    %37 = vector.load %arg7[%c0_18, %c0_19] : memref<2x32xf32, #tpu.memory_space<vmem>>, vector<2x8xf32>
    tpu.vector_store %arg7[%c0_18, %c0_19], %36 {strides = array<i32>} : memref<2x32xf32, #tpu.memory_space<vmem>>, vector<2x8xf32>,
    %38 = vector.extract_strided_slice %19 {offsets = [0, 32], sizes = [2, 32], strides = [1, 1]} : vector<2x128xf32> to vector<2x32xf32>
    %39 = vector.shape_cast %38 : vector<2x32xf32> to vector<2x1x32xf32>
    %40 = vector.broadcast %39 : vector<2x1x32xf32> to vector<2x8x32xf32>
    %41 = arith.mulf %40, %21 : vector<2x8x32xf32>
    %cst_20 = arith.constant dense<0.000000e+00> : vector<2x8xf32>
    %42 = vector.multi_reduction <add>, %41, %cst_20 [2] : vector<2x8x32xf32> to vector<2x8xf32>
    %cst_21 = arith.constant dense<0xFF800000> : vector<2xf32>
    %43 = vector.multi_reduction <maximumf>, %42, %cst_21 [1] : vector<2x8xf32> to vector<2xf32>
    %44 = vector.shape_cast %43 : vector<2xf32> to vector<2x1xf32>
    %45 = vector.broadcast %44 : vector<2x1xf32> to vector<2x8xf32>
    %46 = arith.subf %42, %45 : vector<2x8xf32>
    %47 = math.exp %46 : vector<2x8xf32>
    %cst_22 = arith.constant dense<0.000000e+00> : vector<2xf32>
    %48 = vector.multi_reduction <add>, %47, %cst_22 [1] : vector<2x8xf32> to vector<2xf32>
    %49 = vector.shape_cast %48 : vector<2xf32> to vector<2x1xf32>
    %50 = tpu.reciprocal %49 {approx = true} : vector<2x1xf32> -> vector<2x1xf32>
    %51 = vector.broadcast %50 : vector<2x1xf32> to vector<2x8xf32>
    %52 = arith.mulf %47, %51 : vector<2x8xf32>
    %c0_23 = arith.constant 0 : index
    %c8 = arith.constant 8 : index
    %53 = vector.load %arg7[%c0_23, %c8] : memref<2x32xf32, #tpu.memory_space<vmem>>, vector<2x8xf32>
    tpu.vector_store %arg7[%c0_23, %c8], %52 {strides = array<i32>} : memref<2x32xf32, #tpu.memory_space<vmem>>, vector<2x8xf32>,
    %54 = vector.extract_strided_slice %19 {offsets = [0, 64], sizes = [2, 32], strides = [1, 1]} : vector<2x128xf32> to vector<2x32xf32>
    %55 = vector.shape_cast %54 : vector<2x32xf32> to vector<2x1x32xf32>
    %56 = vector.broadcast %55 : vector<2x1x32xf32> to vector<2x8x32xf32>
    %57 = arith.mulf %56, %21 : vector<2x8x32xf32>
    %cst_24 = arith.constant dense<0.000000e+00> : vector<2x8xf32>
    %58 = vector.multi_reduction <add>, %57, %cst_24 [2] : vector<2x8x32xf32> to vector<2x8xf32>
    %cst_25 = arith.constant dense<0xFF800000> : vector<2xf32>
    %59 = vector.multi_reduction <maximumf>, %58, %cst_25 [1] : vector<2x8xf32> to vector<2xf32>
    %60 = vector.shape_cast %59 : vector<2xf32> to vector<2x1xf32>
    %61 = vector.broadcast %60 : vector<2x1xf32> to vector<2x8xf32>
    %62 = arith.subf %58, %61 : vector<2x8xf32>
    %63 = math.exp %62 : vector<2x8xf32>
    %cst_26 = arith.constant dense<0.000000e+00> : vector<2xf32>
    %64 = vector.multi_reduction <add>, %63, %cst_26 [1] : vector<2x8xf32> to vector<2xf32>
    %65 = vector.shape_cast %64 : vector<2xf32> to vector<2x1xf32>
    %66 = tpu.reciprocal %65 {approx = true} : vector<2x1xf32> -> vector<2x1xf32>
    %67 = vector.broadcast %66 : vector<2x1xf32> to vector<2x8xf32>
    %68 = arith.mulf %63, %67 : vector<2x8xf32>
    %c0_27 = arith.constant 0 : index
    %c16 = arith.constant 16 : index
    %69 = vector.load %arg7[%c0_27, %c16] : memref<2x32xf32, #tpu.memory_space<vmem>>, vector<2x8xf32>
    tpu.vector_store %arg7[%c0_27, %c16], %68 {strides = array<i32>} : memref<2x32xf32, #tpu.memory_space<vmem>>, vector<2x8xf32>,
    %70 = vector.extract_strided_slice %19 {offsets = [0, 96], sizes = [2, 32], strides = [1, 1]} : vector<2x128xf32> to vector<2x32xf32>
    %71 = vector.shape_cast %70 : vector<2x32xf32> to vector<2x1x32xf32>
    %72 = vector.broadcast %71 : vector<2x1x32xf32> to vector<2x8x32xf32>
    %73 = arith.mulf %72, %21 : vector<2x8x32xf32>
    %cst_28 = arith.constant dense<0.000000e+00> : vector<2x8xf32>
    %74 = vector.multi_reduction <add>, %73, %cst_28 [2] : vector<2x8x32xf32> to vector<2x8xf32>
    %cst_29 = arith.constant dense<0xFF800000> : vector<2xf32>
    %75 = vector.multi_reduction <maximumf>, %74, %cst_29 [1] : vector<2x8xf32> to vector<2xf32>
    %76 = vector.shape_cast %75 : vector<2xf32> to vector<2x1xf32>
    %77 = vector.broadcast %76 : vector<2x1xf32> to vector<2x8xf32>
    %78 = arith.subf %74, %77 : vector<2x8xf32>
    %79 = math.exp %78 : vector<2x8xf32>
    %cst_30 = arith.constant dense<0.000000e+00> : vector<2xf32>
    %80 = vector.multi_reduction <add>, %79, %cst_30 [1] : vector<2x8xf32> to vector<2xf32>
    %81 = vector.shape_cast %80 : vector<2xf32> to vector<2x1xf32>
    %82 = tpu.reciprocal %81 {approx = true} : vector<2x1xf32> -> vector<2x1xf32>
    %83 = vector.broadcast %82 : vector<2x1xf32> to vector<2x8xf32>
    %84 = arith.mulf %79, %83 : vector<2x8xf32>
    %c0_31 = arith.constant 0 : index
    %c24 = arith.constant 24 : index
    %85 = vector.load %arg7[%c0_31, %c24] : memref<2x32xf32, #tpu.memory_space<vmem>>, vector<2x8xf32>
    tpu.vector_store %arg7[%c0_31, %c24], %84 {strides = array<i32>} : memref<2x32xf32, #tpu.memory_space<vmem>>, vector<2x8xf32>,
    return
  }
  func.func @transform_0(%arg0: i32) -> (i32, i32) {
    %c0_i32 = arith.constant 0 : i32
    %c0_i32_0 = arith.constant 0 : i32
    return %arg0, %c0_i32 : i32, i32
  }
  func.func @transform_1(%arg0: i32) -> (i32, i32, i32) {
    %c0_i32 = arith.constant 0 : i32
    %c0_i32_0 = arith.constant 0 : i32
    %c0_i32_1 = arith.constant 0 : i32
    return %arg0, %c0_i32, %c0_i32_0 : i32, i32, i32
  }
  func.func @transform_2(%arg0: i32) -> (i32, i32) {
    %c0_i32 = arith.constant 0 : i32
    %c0_i32_0 = arith.constant 0 : i32
    %c0_i32_1 = arith.constant 0 : i32
    return %c0_i32, %c0_i32_0 : i32, i32
  }
  func.func @transform_3(%arg0: i32) -> (i32, i32) {
    %c0_i32 = arith.constant 0 : i32
    %c0_i32_0 = arith.constant 0 : i32
    %c0_i32_1 = arith.constant 0 : i32
    return %c0_i32, %c0_i32_0 : i32, i32
  }
  func.func @transform_4(%arg0: i32) -> (i32, i32) {
    %c0_i32 = arith.constant 0 : i32
    %c0_i32_0 = arith.constant 0 : i32
    %c0_i32_1 = arith.constant 0 : i32
    return %c0_i32, %c0_i32_0 : i32, i32
  }
  func.func @transform_5(%arg0: i32) -> (i32, i32) {
    %c0_i32 = arith.constant 0 : i32
    %c0_i32_0 = arith.constant 0 : i32
    %c0_i32_1 = arith.constant 0 : i32
    return %c0_i32, %c0_i32_0 : i32, i32
  }
  func.func @transform_6(%arg0: i32) -> (i32, i32) {
    %c0_i32 = arith.constant 0 : i32
    %c0_i32_0 = arith.constant 0 : i32
    return %arg0, %c0_i32 : i32, i32
  }
}

</mosaic_0001>

<bundles_post_ra>
// kernel: tpu_custom_call.1
= control target key start
LH: loop header
LB: loop body
LE: loop exit
PB: predicated region body
PF: predicated region fallthrough
CT: control target
= control target key end

     0   :  { %v900_v1 = vmov 0   ;;  %v73_v5 = vlaneseq  ;;  %v901_v8 = vmov 1966171168   ;;  %s1148_s0 = inlined_call_operand.vmem [shape: bf16[2,224], index: 0, kind: input, shape index: {}]   ;;  %s1149_s1 = inlined_call_operand.vmem [shape: bf16[2,8,32], index: 1, kind: input, shape index: {}]   ;;  %s1150_s2 = inlined_call_operand.vmem [shape: bf16[224,32], index: 2, kind: input, shape index: {}]   ;;  %s1151_s3 = inlined_call_operand.vmem [shape: f32[1,32], index: 3, kind: input, shape index: {}]   ;;  %s1152_s4 = inlined_call_operand.vmem [shape: bf16[32,128], index: 4, kind: input, shape index: {}]   ;;  %s1153_s5 = inlined_call_operand.vmem [shape: f32[1,128], index: 5, kind: input, shape index: {}]   ;;  %s1154_s6 = inlined_call_operand.hbm [shape: f32[2,32], index: 6, kind: output, shape index: {}]  }
   0x1   :  { %v832_v0 = vld [vmem:[%s1150_s2] sm:$0xff]   ;;  %173 = vmatprep.subr.bf16.mxu0 %v900_v1  ;;  %831 = vset.pattern.permute.xlu1 %v900_v1  ;;  %v833_v2 = vld [vmem:[%s1150_s2 + $0x8] sm:$0xff]   ;;  %v834_v3 = vld [vmem:[%s1150_s2 + $0x10] sm:$0xff]   ;;  %v71_v9 = vunpack.c.l.s4 %v901_v8 }
   0x2   :  { %174 = vmatpush1.bf16.msra.mxu0 %v832_v0  ;;  %830 = vset.pattern.permute.xlu0 %v900_v1  ;;  %v835_v4 = vld [vmem:[%s1150_s2 + $0x18] sm:$0xff]   ;;  %v836_v6 = vld [vmem:[%s1150_s2 + $0x20] sm:$0xff]   ;;  %v962_v10 = vshrl.u32 %v73_v5, 7 }
   0x3   :  { %175 = vmatprep.subr.bf16.mxu0 %v900_v1  ;;  %v771_v7 = vld.sshfl [vmem:[%s1148_s0] sm:$0x11 pattern:$0x75316420] }
   0x6   :  { %176 = vmatpush1.bf16.msra.mxu0 %v833_v2 }
   0x7   :  { %177 = vmatprep.subr.bf16.mxu0 %v900_v1 }
   0xa   :  { %178 = vmatpush1.bf16.msra.mxu0 %v834_v3 }
   0xb   :  { %179 = vmatprep.subr.bf16.mxu0 %v900_v1 }
   0xe   :  { %180 = vmatpush1.bf16.msra.mxu0 %v835_v4 }
   0xf   :  { %181 = vmatprep.subr.bf16.mxu0 %v900_v1 }
  0x10   :  { %11 = vsyncpa [#allocation3], 0  ;;  %v69_v11 = vcombine.high %v771_v7, %v771_v7  ;;  %v72_v12 = vunpack.c.0.s8 %v71_v9  ;;  %v837_v13 = vld [vmem:[%s1150_s2 + $0x28] sm:$0xff]   ;;  %vm169_vm0 = vcmask 785408   ;;  %v838_v16 = vld [vmem:[%s1150_s2 + $0x30] sm:$0xff]   ;;  %v902_v26 = vmov 0.0  }
  0x11   :  { %v839_v17 = vld [vmem:[%s1150_s2 + $0x38] sm:$0xff]   ;;  %v840_v18 = vld [vmem:[%s1150_s2 + $0x40] sm:$0xff]   ;;  %v841_v19 = vld [vmem:[%s1150_s2 + $0x48] sm:$0xff]   ;;  %799 = vmatprep.subr.bf16.mxu1 %v902_v26  ;;  %vm903_vm1 = vmmov 0   ;;  %s904_s7 = smov 32   ;;  %s905_s8 = smov 96  }
  0x12   :  { %182 = vmatpush1.bf16.msra.mxu0 %v836_v6  ;;  %v968_v14 = vsub.s32 %v72_v12, %v962_v10  ;;  %v842_v20 = vld [vmem:[%s1150_s2 + $0x50] sm:$0xff]   ;;  %v843_v21 = vld [vmem:[%s1150_s2 + $0x58] sm:$0xff]   ;;  %v844_v22 = vld [vmem:[%s1150_s2 + $0x60] sm:$0xff]   ;;  %803 = vmatprep.mubr.msk.bf16.mxu1 %vm903_vm1, %v902_v26  ;;  %vm245_vm2 = vcmask 261120   ;;  %v1021_v52 = vsub.s32 0, %v962_v10  ;;  %vm346_vm3 = vcmask 1041409  }
  0x13   :  { %183 = vmatprep.subr.bf16.mxu0 %v900_v1  ;;  %v845_v23 = vld [vmem:[%s1150_s2 + $0x68] sm:$0xff]   ;;  %v846_v25 = vld [vmem:[%s1152_s4] sm:$0xff]   ;;  %vm349_vm4 = vcmask 58368   ;;  %vm534_vm5 = vcmask 123968   ;;  %vm644_vm6 = vcmask 189568   ;;  %vm754_vm7 = vcmask 255168  }
  0x14   :  { %v83_v15 = vrot.slane %v69_v11, %v968_v14  ;;  %v76_v24 = vrot.slane %v771_v7, %v968_v14  ;;  %800 = vmatpush3.bf16.msra.mxu1 %v846_v25  ;;  %v847_v27 = vld [vmem:[%s1152_s4 + $0x8] sm:$0xff]   ;;  %v1005_v28 = vld [vmem:[%s1149_s1] sm:$0xff]   ;;  %s906_s4 = smov 64  }
  0x15   :  { %801 = vmatprep.subr.bf16.mxu1 %v902_v26  ;;  %v794_v29 = vunpack.c.l.bf16 %v1005_v28  ;;  %v795_v30 = vunpack.c.h.bf16 %v1005_v28  ;;  %v770_v32 = vld [vmem:[%s1151_s3] ss:$0 sm:$0xff]  ;;  %s907_s3 = smov [#allocation2]  }
  0x16   :  { %184 = vmatpush1.bf16.msra.mxu0 %v837_v13  ;;  %786 = vmatprep.mubr.msk.bf16.mxu0 %vm169_vm0, %v83_v15  ;;  %v788_v45 = vld [vmem:[%s1153_s5] ss:$0 sm:$0xff]  ;;  %s762_s5 = sshll.u32 %s907_s3, 4  ;;  %s763_s5 = int_to_ptr.vmem [resolvable:$true] %s762_s5 }
  0x17   :  { %185 = vmatprep.subr.bf16.mxu0 %v900_v1  ;;  %v815_v31 = vpack.i.bf16 %v795_v30, %v794_v29  ;;  %s876_s11 = scalar_lea.vmem %s763_s5, 32  ;;  %p881_p1 = scmp.lt.s32.totalorder %s763_s5, %s763_s5 }
  0x18   :  { %802 = vmatpush3.bf16.msra.mxu1 %v847_v27  ;;  %v1042_v27 = vand.u32 127, %v73_v5  ;;  %p877_p0 = scmp.ne.s32.totalorder %s763_s5, %s876_s11  ;;  %p882_p2 = scmp.lt.s32.totalorder %s876_s11, %s876_s11 }
  0x19   :  { %816 = vrot.lane.b32.xlu0 %v815_v31, %s904_s7  ;;  %826 = vrot.lane.b32.xlu1 %v815_v31, %s905_s8 }
  0x1a   :  { %186 = vmatpush1.bf16.msra.mxu0 %v838_v16  ;;  %v1046_v28 = vsub.s32 %v1042_v27, %v962_v10  ;;  %p883_p3 = por %p882_p2, %p881_p1 }
  0x1b   :  { %187 = vmatprep.subr.bf16.mxu0 %v900_v1 }
  0x1c   :  { %p884_p4 = pnand %p883_p3, %p877_p0 }
  0x1d   :  { %821 = vrot.lane.b32.xlu0 %v815_v31, %s906_s4 }
  0x1e   :  { %188 = vmatpush1.bf16.msra.mxu0 %v839_v17 }
  0x1f   :  { %189 = vmatprep.subr.bf16.mxu0 %v900_v1 }
  0x22   :  { %190 = vmatpush1.bf16.msra.mxu0 %v840_v18 }
  0x23   :  { %191 = vmatprep.subr.bf16.mxu0 %v900_v1 }
  0x26   :  { %192 = vmatpush1.bf16.msra.mxu0 %v841_v19 }
  0x27   :  { %193 = vmatprep.subr.bf16.mxu0 %v900_v1 }
  0x2a   :  { %194 = vmatpush1.bf16.msra.mxu0 %v842_v20 }
  0x2b   :  { %195 = vmatprep.subr.bf16.mxu0 %v900_v1 }
  0x2e   :  { %196 = vmatpush1.bf16.msra.mxu0 %v843_v21 }
  0x2f   :  { %197 = vmatprep.subr.bf16.mxu0 %v900_v1 }
  0x32   :  { %198 = vmatpush1.bf16.msra.mxu0 %v844_v22 }
  0x33   :  { %199 = vmatprep.subr.bf16.mxu0 %v900_v1 }
  0x36   :  { %200 = vmatpush1.bf16.msra.mxu0 %v845_v23 }
  0x39   :  { %206 = vmatmul.mubr.bf16.vlgmr.msra.gmra.mrb[0].mxu0 %v76_v24 }
  0x8b   :  { %v817_v47 = vpop.permute.xlu0 %816  ;;  %v827_v0 = vpop.permute.xlu1 %826 }
  0x8c   :  { %v818_v56 = vunpack.i.l.bf16 %v817_v47  ;;  %v819_v60 = vunpack.i.h.bf16 %v817_v47  ;;  %v828_v3 = vunpack.i.l.bf16 %v827_v0  ;;  %v829_v6 = vunpack.i.h.bf16 %v827_v0 }
  0x8f   :  { %v822_v57 = vpop.permute.xlu0 %821 }
  0x90   :  { %v823_v63 = vunpack.i.l.bf16 %v822_v57  ;;  %v824_v2 = vunpack.i.h.bf16 %v822_v57 }
 0x10c   :  { %v207_v33 = vpop.f32.mrb[0].mxu0 }
 0x10d   :  { %v208_v34 = vadd.f32 %v770_v32, %v207_v33  ;;  %v209_v35 = vpop.f32.mrb[1].mxu0 }
 0x10e   :  { %v210_v36 = vpop.f32.mrb[2].mxu0 }
 0x10f   :  { %v787_v37 = vmul.f32 -1.702, %v208_v34  ;;  %v211_v38 = vpop.f32.mrb[3].mxu0 }
 0x111   :  { %v215_v39 = vmul.f32 1.442695, %v787_v37 }
 0x113   :  { %848 = vpow2.f32 %v215_v39 }
 0x11d   :  { %v849_v40 = vpop.eup %848 }
 0x11e   :  { %v217_v41 = vadd.f32 1.0, %v849_v40 }
 0x120   :  { %850 = vrcp.f32 %v217_v41 }
 0x12a   :  { %v851_v42 = vpop.eup %850 }
 0x12b   :  { %v220_v43 = vmul.f32 %v851_v42, %v208_v34 }
 0x12d   :  { %v221_v44 = vpack.c.bf16 %v220_v43, %v220_v43 }
 0x12f   :  { %804 = vmatmul.mubr.msk.bf16.vlgmr.msra.gmra.mrb[0].mxu1 %vm245_vm2, %v221_v44 }
 0x202   :  { %v283_v46 = vpop.f32.mrb[0].mxu1 }
 0x203   :  { %v284_v48 = vadd.f32 %v788_v45, %v283_v46  ;;  %v805_v49 = vpop.f32.mrb[1].mxu1 }
 0x204   :  { %v286_v50 = vpop.f32.mrb[2].mxu1 }
 0x205   :  { %v300_v51 = vrot.slane %v284_v48, %v968_v14  ;;  %v806_v53 = vpop.f32.mrb[3].mxu1 }
 0x206   :  { %v1065_v53 = vsub.s32 1, %v962_v10 }
 0x207   :  { %v301_v54 = vcombine.high %v300_v51, %v300_v51  ;;  %v308_v55 = vrot.slane %v300_v51, %v968_v14 }
 0x209   :  { %v315_v58 = vrot.slane %v301_v54, %v968_v14  ;;  %v319_v59 = vrot.slane %v308_v55, %v1021_v52 }
 0x20b   :  { %v323_v61 = vrot.slane %v315_v58, %v1021_v52  ;;  %v432_v62 = vmul.f32 %v818_v56, %v319_v59  ;;  %v542_v4 = vmul.f32 %v823_v63, %v319_v59  ;;  %v652_v8 = vmul.f32 %v828_v3, %v319_v59 }
 0x20c   :  { %v326_v12 = vmul.f32 %v794_v29, %v319_v59 }
 0x20d   :  { %v433_v1 = vmul.f32 %v819_v60, %v323_v61  ;;  %436 = vrot.lane.b32.xlu1 %v432_v62, %s905_s8  ;;  %v543_v7 = vmul.f32 %v824_v2, %v323_v61  ;;  %v653_v9 = vmul.f32 %v829_v6, %v323_v61  ;;  %v327_v11 = vmul.f32 %v795_v30, %v323_v61 }
 0x20e   :  { %v328_v14 = vsel %vm245_vm2, %v326_v12, 0.0 }
 0x20f   :  { %438 = vrot.lane.b32.xlu0 %v433_v1, %s905_s8  ;;  %v331_v13 = vsel %vm245_vm2, %v327_v11, 0.0 }
 0x211   :  { %546 = vrot.lane.b32.xlu1 %v542_v4, %s906_s4 }
 0x213   :  { %548 = vrot.lane.b32.xlu0 %v543_v7, %s906_s4 }
 0x215   :  { %656 = vrot.lane.b32.xlu1 %v652_v8, %s904_s7 }
 0x217   :  { %658 = vrot.lane.b32.xlu0 %v653_v9, %s904_s7 }
 0x236   :  { %332 = vadd.xlane.f32.xlu0 %v331_v13 }
 0x239   :  { %329 = vadd.xlane.f32.xlu1 %v328_v14 }
 0x27f   :  { %v437_v15 = vpop.permute.xlu1 %436 }
 0x280   :  { %v442_v16 = vsel %vm245_vm2, %v437_v15, 0.0 }
 0x281   :  { %v439_v17 = vpop.permute.xlu0 %438  ;;  %443 = vadd.xlane.f32.xlu0 %v442_v16 }
 0x282   :  { %v445_v18 = vsel %vm245_vm2, %v439_v17, 0.0 }
 0x283   :  { %v547_v19 = vpop.permute.xlu1 %546  ;;  %446 = vadd.xlane.f32.xlu1 %v445_v18 }
 0x284   :  { %v552_v20 = vsel %vm245_vm2, %v547_v19, 0.0 }
 0x285   :  { %v549_v21 = vpop.permute.xlu0 %548  ;;  %553 = vadd.xlane.f32.xlu0 %v552_v20 }
 0x286   :  { %v555_v22 = vsel %vm245_vm2, %v549_v21, 0.0 }
 0x287   :  { %v657_v23 = vpop.permute.xlu1 %656  ;;  %556 = vadd.xlane.f32.xlu1 %v555_v22 }
 0x288   :  { %v662_v24 = vsel %vm245_vm2, %v657_v23, 0.0 }
 0x289   :  { %v659_v25 = vpop.permute.xlu0 %658  ;;  %663 = vadd.xlane.f32.xlu0 %v662_v24 }
 0x28a   :  { %v665_v26 = vsel %vm245_vm2, %v659_v25, 0.0 }
 0x28b   :  { %666 = vadd.xlane.f32.xlu1 %v665_v26 }
 0x2c3   :  { %v333_v29 = vpop.xlane.xlu0 %332 }
 0x2c4   :  { %v345_v31 = vrot.slane %v333_v29, %v1046_v28 }
 0x2c6   :  { %v330_v30 = vpop.xlane.xlu1 %329 }
 0x2c7   :  { %v341_v32 = vrot.slane %v330_v30, %v1046_v28 }
 0x2c9   :  { %v347_v33 = vsel %vm346_vm3, %v345_v31, %v341_v32 }
 0x2ca   :  { %v350_v34 = vsel %vm349_vm4, %v347_v33, -inf }
 0x2cb   :  { %351 = vmax.xlane.f32.xlu0 %v350_v34 }
 0x30e   :  { %v444_v35 = vpop.xlane.xlu0 %443 }
 0x30f   :  { %v453_v36 = vrot.slane %v444_v35, %v1046_v28 }
 0x310   :  { %v447_v5 = vpop.xlane.xlu1 %446 }
 0x311   :  { %v457_v37 = vrot.slane %v447_v5, %v1046_v28 }
 0x312   :  { %v554_v38 = vpop.xlane.xlu0 %553 }
 0x313   :  { %v458_v39 = vsel %vm346_vm3, %v457_v37, %v453_v36  ;;  %v563_v42 = vrot.slane %v554_v38, %v1046_v28 }
 0x314   :  { %v557_v40 = vpop.xlane.xlu1 %556  ;;  %v460_v41 = vsel %vm349_vm4, %v458_v39, -inf }
 0x315   :  { %v567_v43 = vrot.slane %v557_v40, %v1046_v28  ;;  %461 = vmax.xlane.f32.xlu1 %v460_v41 }
 0x316   :  { %v664_v44 = vpop.xlane.xlu0 %663 }
 0x317   :  { %v568_v45 = vsel %vm346_vm3, %v567_v43, %v563_v42  ;;  %v673_v48 = vrot.slane %v664_v44, %v1046_v28 }
 0x318   :  { %v667_v46 = vpop.xlane.xlu1 %666  ;;  %v570_v47 = vsel %vm349_vm4, %v568_v45, -inf }
 0x319   :  { %v677_v49 = vrot.slane %v667_v46, %v1046_v28  ;;  %571 = vmax.xlane.f32.xlu0 %v570_v47 }
 0x31b   :  { %v678_v50 = vsel %vm346_vm3, %v677_v49, %v673_v48 }
 0x31c   :  { %v680_v51 = vsel %vm349_vm4, %v678_v50, -inf }
 0x31d   :  { %681 = vmax.xlane.f32.xlu1 %v680_v51 }
 0x358   :  { %v352_v54 = vpop.xlane.xlu0 %351 }
 0x359   :  { %v357_v55 = vrot.slane %v352_v54, %v1021_v52  ;;  %v361_v56 = vrot.slane %v352_v54, %v1065_v53 }
 0x35b   :  { %v364_v57 = vsub.f32 %v330_v30, %v357_v55  ;;  %v365_v58 = vsub.f32 %v333_v29, %v361_v56 }
 0x35d   :  { %v366_v59 = vmul.f32 1.442695, %v364_v57  ;;  %v368_v60 = vmul.f32 1.442695, %v365_v58 }
 0x35f   :  { %852 = vpow2.f32 %v366_v59 }
 0x360   :  { %854 = vpow2.f32 %v368_v60 }
 0x369   :  { %v1069_v61 = vpop.eup %852 }
 0x36a   :  { %v1071_v62 = vpop.eup %854  ;;  %373 = vperm.xlu0 %830, %v1069_v61  }
 0x36b   :  { %376 = vperm.xlu1 %831, %v1071_v62  }
 0x3a2   :  { %v462_v63 = vpop.xlane.xlu1 %461 }
 0x3a3   :  { %v467_v0 = vrot.slane %v462_v63, %v1021_v52  ;;  %v471_v1 = vrot.slane %v462_v63, %v1065_v53 }
 0x3a5   :  { %v474_v2 = vsub.f32 %v444_v35, %v467_v0  ;;  %v475_v3 = vsub.f32 %v447_v5, %v471_v1 }
 0x3a6   :  { %v572_v4 = vpop.xlane.xlu0 %571 }
 0x3a7   :  { %v476_v6 = vmul.f32 1.442695, %v474_v2  ;;  %v478_v7 = vmul.f32 1.442695, %v475_v3  ;;  %v577_v8 = vrot.slane %v572_v4, %v1021_v52  ;;  %v581_v9 = vrot.slane %v572_v4, %v1065_v53 }
 0x3a9   :  { %856 = vpow2.f32 %v476_v6  ;;  %v584_v11 = vsub.f32 %v554_v38, %v577_v8  ;;  %v585_v12 = vsub.f32 %v557_v40, %v581_v9 }
 0x3aa   :  { %858 = vpow2.f32 %v478_v7  ;;  %v682_v13 = vpop.xlane.xlu1 %681 }
 0x3ab   :  { %v586_v14 = vmul.f32 1.442695, %v584_v11  ;;  %v687_v15 = vrot.slane %v682_v13, %v1021_v52  ;;  %v588_v16 = vmul.f32 1.442695, %v585_v12  ;;  %v691_v17 = vrot.slane %v682_v13, %v1065_v53 }
 0x3ad   :  { %860 = vpow2.f32 %v586_v14  ;;  %v694_v18 = vsub.f32 %v664_v44, %v687_v15  ;;  %v695_v19 = vsub.f32 %v667_v46, %v691_v17 }
 0x3ae   :  { %862 = vpow2.f32 %v588_v16 }
 0x3af   :  { %v696_v20 = vmul.f32 1.442695, %v694_v18  ;;  %v698_v23 = vmul.f32 1.442695, %v695_v19 }
 0x3b1   :  { %864 = vpow2.f32 %v696_v20 }
 0x3b2   :  { %866 = vpow2.f32 %v698_v23  ;;  %v633_v23 = vadd.s32 4294967280, %v1042_v27 }
 0x3b3   :  { %v857_v21 = vpop.eup %856 }
 0x3b4   :  { %v1081_v22 = vpop.eup %858  ;;  %483 = vperm.xlu0 %830, %v857_v21  }
 0x3b5   :  { %486 = vperm.xlu1 %831, %v1081_v22  }
 0x3b7   :  { %v1084_v24 = vpop.eup %860 }
 0x3b8   :  { %593 = vperm.xlu0 %830, %v1084_v24   ;;  %v863_v25 = vpop.eup %862 }
 0x3bb   :  { %v1087_v26 = vpop.eup %864 }
 0x3bc   :  { %596 = vperm.xlu0 %830, %v863_v25   ;;  %v1090_v29 = vpop.eup %866 }
 0x3c0   :  { %703 = vperm.xlu0 %830, %v1087_v26  }
 0x3c4   :  { %706 = vperm.xlu0 %830, %v1090_v29  }
 0x3e9   :  { %v374_v30 = vpop.permute.xlu0 %373 }
 0x3ea   :  { %v377_v31 = vpop.permute.xlu1 %376  ;;  %v381_v32 = vrot.slane %v374_v30, %v1046_v28 }
 0x3eb   :  { %v385_v33 = vrot.slane %v377_v31, %v1046_v28 }
 0x3ed   :  { %v386_v34 = vsel %vm346_vm3, %v385_v33, %v381_v32 }
 0x3ee   :  { %v388_v35 = vsel %vm349_vm4, %v386_v34, 0.0 }
 0x3ef   :  { %389 = vadd.xlane.f32.xlu1 %v388_v35  ;;  %v743_v35 = vadd.s32 4294967272, %v1042_v27 }
 0x433   :  { %v484_v5 = vpop.permute.xlu0 %483 }
 0x434   :  { %v487_v36 = vpop.permute.xlu1 %486  ;;  %v491_v37 = vrot.slane %v484_v5, %v1046_v28 }
 0x435   :  { %v495_v38 = vrot.slane %v487_v36, %v1046_v28  ;;  %v746_v36 = vsub.s32 %v743_v35, %v962_v10 }
 0x437   :  { %v594_v39 = vpop.permute.xlu0 %593  ;;  %v496_v40 = vsel %vm346_vm3, %v495_v38, %v491_v37 }
 0x438   :  { %v498_v41 = vsel %vm349_vm4, %v496_v40, 0.0  ;;  %v601_v43 = vrot.slane %v594_v39, %v1046_v28 }
 0x439   :  { %499 = vadd.xlane.f32.xlu1 %v498_v41 }
 0x43b   :  { %v597_v42 = vpop.permute.xlu0 %596 }
 0x43c   :  { %v605_v44 = vrot.slane %v597_v42, %v1046_v28 }
 0x43e   :  { %v606_v45 = vsel %vm346_vm3, %v605_v44, %v601_v43 }
 0x43f   :  { %v704_v46 = vpop.permute.xlu0 %703  ;;  %v608_v47 = vsel %vm349_vm4, %v606_v45, 0.0 }
 0x440   :  { %609 = vadd.xlane.f32.xlu0 %v608_v47  ;;  %v711_v49 = vrot.slane %v704_v46, %v1046_v28 }
 0x443   :  { %v707_v48 = vpop.permute.xlu0 %706 }
 0x444   :  { %v715_v50 = vrot.slane %v707_v48, %v1046_v28 }
 0x446   :  { %v716_v51 = vsel %vm346_vm3, %v715_v50, %v711_v49 }
 0x447   :  { %v718_v54 = vsel %vm349_vm4, %v716_v51, 0.0 }
 0x448   :  { %719 = vadd.xlane.f32.xlu1 %v718_v54 }
 0x47c   :  { %v390_v55 = vpop.xlane.xlu1 %389 }
 0x47d   :  { %868 = vrcp.f32 %v390_v55 }
 0x487   :  { %v869_v56 = vpop.eup %868 }
 0x488   :  { %v396_v57 = vrot.slane %v869_v56, %v1021_v52  ;;  %v400_v59 = vrot.slane %v869_v56, %v1065_v53 }
 0x48a   :  { %v403_v58 = vmul.f32 %v1069_v61, %v396_v57  ;;  %v404_v60 = vmul.f32 %v1071_v62, %v400_v59 }
 0x48c   :  { %408 = vperm.xlu0 %830, %v403_v58  }
 0x490   :  { %411 = vperm.xlu0 %830, %v404_v60  }
 0x4c6   :  { %v500_v63 = vpop.xlane.xlu1 %499 }
 0x4c7   :  { %870 = vrcp.f32 %v500_v63 }
 0x4cd   :  { %v610_v0 = vpop.xlane.xlu0 %609 }
 0x4ce   :  { %872 = vrcp.f32 %v610_v0 }
 0x4d1   :  { %v871_v1 = vpop.eup %870 }
 0x4d2   :  { %v506_v2 = vrot.slane %v871_v1, %v1021_v52  ;;  %v510_v4 = vrot.slane %v871_v1, %v1065_v53 }
 0x4d4   :  { %v513_v3 = vmul.f32 %v857_v21, %v506_v2  ;;  %v514_v7 = vmul.f32 %v1081_v22, %v510_v4 }
 0x4d5   :  { %v720_v6 = vpop.xlane.xlu1 %719 }
 0x4d6   :  { %518 = vperm.xlu0 %830, %v513_v3   ;;  %874 = vrcp.f32 %v720_v6 }
 0x4d8   :  { %v873_v61 = vpop.eup %872 }
 0x4d9   :  { %v620_v8 = vrot.slane %v873_v61, %v1065_v53  ;;  %v616_v62 = vrot.slane %v873_v61, %v1021_v52 }
 0x4da   :  { %521 = vperm.xlu0 %830, %v514_v7  }
 0x4db   :  { %v624_v9 = vmul.f32 %v863_v25, %v620_v8  ;;  %v623_v11 = vmul.f32 %v1084_v24, %v616_v62  ;;  %v636_v25 = vsub.s32 %v633_v23, %v962_v10 }
 0x4dd   :  { %631 = vperm.xlu1 %831, %v624_v9  }
 0x4de   :  { %628 = vperm.xlu0 %830, %v623_v11  }
 0x4e0   :  { %v875_v12 = vpop.eup %874 }
 0x4e1   :  { %v726_v13 = vrot.slane %v875_v12, %v1021_v52  ;;  %v730_v15 = vrot.slane %v875_v12, %v1065_v53  ;;  %v523_v52 = vadd.s32 4294967288, %v1042_v27 }
 0x4e3   :  { %v733_v14 = vmul.f32 %v1087_v26, %v726_v13  ;;  %v734_v16 = vmul.f32 %v1090_v29, %v730_v15  ;;  %v526_v53 = vsub.s32 %v523_v52, %v962_v10 }
 0x4e5   :  { %738 = vperm.xlu1 %831, %v733_v14  }
 0x4e9   :  { %741 = vperm.xlu1 %831, %v734_v16  }
 0x50b   :  { %v409_v17 = vpop.permute.xlu0 %408 }
 0x50c   :  { %v416_v19 = vrot.slane %v409_v17, %v1046_v28 }
 0x50f   :  { %v412_v18 = vpop.permute.xlu0 %411 }
 0x510   :  { %v420_v20 = vrot.slane %v412_v18, %v1046_v28 }
 0x512   :  { %v421_v21 = vsel %vm346_vm3, %v420_v20, %v416_v19 }
 0x513   :  { %423 = vst.msk [vmem:[#allocation2] sm:$0x3] %vm349_vm4, %v421_v21 }
 0x555   :  { %v519_v22 = vpop.permute.xlu0 %518 }
 0x556   :  { %v527_v26 = vrot.slane %v519_v22, %v526_v53 }
 0x559   :  { %v522_v24 = vpop.permute.xlu0 %521 }
 0x55a   :  { %v531_v29 = vrot.slane %v522_v24, %v526_v53 }
 0x55c   :  { %v532_v30 = vsel %vm346_vm3, %v531_v29, %v527_v26  ;;  %v632_v28 = vpop.permute.xlu1 %631 }
 0x55d   :  { %v641_v31 = vrot.slane %v632_v28, %v636_v25  ;;  %v629_v32 = vpop.permute.xlu0 %628  ;;  %535 = vst.msk [vmem:[#allocation2] sm:$0x3] %vm534_vm5, %v532_v30 }
 0x55e   :  { %v637_v33 = vrot.slane %v629_v32, %v636_v25 }
 0x560   :  { %v642_v34 = vsel %vm346_vm3, %v641_v31, %v637_v33 }
 0x561   :  { %645 = vst.msk [vmem:[#allocation2] sm:$0x3] %vm644_vm6, %v642_v34 }
 0x564   :  { %v739_v5 = vpop.permute.xlu1 %738 }
 0x565   :  { %v747_v38 = vrot.slane %v739_v5, %v746_v36 }
 0x568   :  { %v742_v37 = vpop.permute.xlu1 %741 }
 0x569   :  { %v751_v39 = vrot.slane %v742_v37, %v746_v36 }
 0x56b   :  { %v752_v40 = vsel %vm346_vm3, %v751_v39, %v747_v38 }
 0x56c   :  { %755 = vst.msk [vmem:[#allocation2] sm:$0x3] %vm754_vm7, %v752_v40 }
 0x56d   :  { %887 = shalt.err (!%p884_p4)
}
 0x56e   :  { %s888_s14 = scalar_lea.hbm %s1154_s6, 32 }
 0x56f   :  { %p889_p5 = scmp.ne.s32.totalorder %s1154_s6, %s888_s14  ;;  %p892_p6 = scmp.lt.u32.totalorder %s888_s14, %s1154_s6 }
 0x571   :  { %p894_p7 = pnand %p892_p6, %p889_p5 }
 0x573   :  { %897 = shalt.err (!%p894_p7)
}
 0x574   :  { %765 = dma.vmem_to_hbm [thread:$0]  %s763_s5, 32, %s1154_s6, [#allocation3]  }
 0x575   :  { %898 = dma.done.wait [#allocation3], 32  }
 0x576   :  { %899 = vsyncadd [#allocation3], 4294967264 }
 0x577   :  { %769 = vsyncpa [#allocation3], 1 }

</bundles_post_ra>
